<compile_context>
chip_gen: v7x
topology: tpu7x:2x2x1
jax: 0.10.0
libtpu: 0.0.40
codegen_flags: <defaults>
</compile_context>

<pallas_src>
import functools

import jax
import jax.numpy as jnp
from jax import lax
from jax.experimental import pallas as pl
from jax.experimental.pallas import tpu as pltpu

GAMMA = 2
ALPHA = 0.4


def _cdiv(a, b):
    return -(-a // b)


def _round_up(x, m):
    return _cdiv(x, m) * m


def _vmem_capacity_bytes():
    try:
        return int(pltpu.get_tpu_info().vmem_capacity_bytes)
    except Exception:
        return 64 * 1024 * 1024          # conservative fallback (v7x-sized)


def _focal_loss_kernel(x_ref, t_ref, out_ref, *, alpha, gamma, n_valid,
                       tile_rows, compute_dtype, emit_partial_sums):
    """One batch tile, row-major layout.

    x_ref  : (TR, C) logits   -- batch rows on sublanes, classes on lanes
    t_ref  : (TR, 1) int32    -- target class indices (precondition: in [0, C))
    out_ref: (1, 128) f32     -- per-tile partial sum   (reduction mean/sum), or
             (TR, 1) f32      -- per-sample focal loss  (reduction 'none')
    """
    i = pl.program_id(0)

    x = x_ref[...].astype(compute_dtype)                       # (TR, C)
    t = t_ref[...]                                              # (TR, 1) int32
    tr, c = x.shape

    # Numerically stable log-sum-exp over the class (lane) axis.
    m = jnp.max(x, axis=1, keepdims=True)                       # (TR, 1)
    e = jnp.exp(x - m)                                          # (TR, C)  EUP
    sum_e = jnp.sum(e.astype(jnp.float32), axis=1, keepdims=True)
    lse = jnp.log(sum_e) + m.astype(jnp.float32)                # (TR, 1) f32

    # Target-class logit via one-hot compare + lane reduce.
    cls = lax.broadcasted_iota(jnp.int32, (tr, c), 1)           # (TR, C)
    tgt_logit = jnp.sum(jnp.where(cls == t, x, 0).astype(jnp.float32),
                        axis=1, keepdims=True)                  # (TR, 1) f32

    ce = lse - tgt_logit                                        # cross entropy
    pt = jnp.exp(-ce)                                           # per-row EUP (cheap, 1/C)
    one_minus_pt = 1.0 - pt

    g = float(gamma)
    if g == 2.0:
        focal_w = jnp.square(one_minus_pt)                      # pure VPU, no log/exp
    elif g == int(g) and g >= 0:
        focal_w = lax.integer_pow(one_minus_pt, int(g))
    else:
        # Clamp: ce can round to a tiny negative, making 1-pt slightly < 0.
        focal_w = jnp.power(jnp.maximum(one_minus_pt, 0.0), g)

    fl = alpha * focal_w * ce                                   # (TR, 1) f32

    # Mask padded tail rows LAST so garbage from the partial block cannot leak.
    row = i * tile_rows + lax.broadcasted_iota(jnp.int32, (tr, 1), 0)
    fl = jnp.where(row < n_valid, fl, 0.0)

    if emit_partial_sums:
        s = jnp.sum(fl)                                         # tile partial sum
        lane = lax.broadcasted_iota(jnp.int32, (1, 128), 1)
        out_ref[...] = jnp.where(lane == 0, s, 0.0)             # lane-dense (1,128) store
    else:
        out_ref[...] = fl


def _pick_tile_rows(n, c, in_itemsize):
    vmem_cap = _vmem_capacity_bytes()
    budget = min(vmem_cap // 3, 32 * 1024 * 1024)
    # Double-buffered logits + targets I/O, plus ~3 f32 (rows, C) in-kernel
    # intermediates (f32 upcast of x, e, one-hot/iota) per row.
    per_row = 2 * (c * in_itemsize + 4) + 3 * c * 4
    t = min(budget // max(per_row, 1), 32768)
    if n >= 4096:
        # Keep >= 4 tiles so both v7x TensorCores get work and the pipeline
        # has blocks to overlap.
        t = min(t, _round_up(_cdiv(n, 4), 128))
    t = min(t, _round_up(n, 8))
    return max(8, (t // 8) * 8)


def focal_loss(logits, targets, *, alpha=ALPHA, gamma=GAMMA, reduction="mean",
               compute_dtype=None):
    """logits: (N, C) float (f32/bf16); targets: (N,) int class indices in [0, C)."""
    n, c = logits.shape
    if compute_dtype is None:
        # bf16 elementwise math for bf16 inputs (v6e/v7x win); f32 otherwise.
        # TODO(synk): on v5e (no bf16 VPU/EUP) pass compute_dtype=jnp.float32.
        compute_dtype = jnp.bfloat16 if logits.dtype == jnp.bfloat16 else jnp.float32

    tgt = targets.astype(jnp.int32).reshape(n, 1)

    tile_rows = _pick_tile_rows(n, c, logits.dtype.itemsize)
    num_tiles = _cdiv(n, tile_rows)

    emit_partial_sums = reduction in ("mean", "sum")
    kernel = functools.partial(
        _focal_loss_kernel, alpha=float(alpha), gamma=gamma, n_valid=n,
        tile_rows=tile_rows, compute_dtype=compute_dtype,
        emit_partial_sums=emit_partial_sums)

    if emit_partial_sums:
        out_shape = jax.ShapeDtypeStruct((1, num_tiles * 128), jnp.float32)
        out_spec = pl.BlockSpec((1, 128), lambda i: (0, i))
        out_bytes = num_tiles * 128 * 4
    else:
        out_shape = jax.ShapeDtypeStruct((num_tiles * tile_rows, 1), jnp.float32)
        out_spec = pl.BlockSpec((tile_rows, 1), lambda i: (i, 0))
        out_bytes = num_tiles * tile_rows * 4

    vmem_limit = int(min(_vmem_capacity_bytes() * 3 // 4, 96 * 1024 * 1024))

    # TODO(synk): for vocab-scale C (where one (tile_rows, C) block no longer
    # fits VMEM) add a class-axis grid dimension with an online max/sum.
    out = pl.pallas_call(
        kernel,
        out_shape=out_shape,
        grid_spec=pltpu.PrefetchScalarGridSpec(
            num_scalar_prefetch=0,
            grid=(num_tiles,),
            in_specs=[
                pl.BlockSpec((tile_rows, c), lambda i: (i, 0)),
                pl.BlockSpec((tile_rows, 1), lambda i: (i, 0)),
            ],
            out_specs=out_spec,
        ),
        compiler_params=pltpu.CompilerParams(
            dimension_semantics=("parallel",),       # shards tiles across TCs on v7x
            vmem_limit_bytes=vmem_limit,
        ),
        cost_estimate=pl.CostEstimate(
            flops=int(7 * n * c + 16 * n),
            transcendentals=int(n * c + 3 * n),
            bytes_accessed=int(n * c * logits.dtype.itemsize + n * 4 + out_bytes),
        ),
    )(logits, tgt)

    if reduction == "mean":
        return jnp.sum(out) / n
    elif reduction == "sum":
        return jnp.sum(out)
    else:
        # Matches PyTorch's fall-through: return per-sample focal losses.
        return out[:n, 0]


def _reference_per_sample(logits, targets, alpha=ALPHA, gamma=GAMMA):
    lse = jax.nn.logsumexp(logits, axis=-1)
    tgt_logit = jnp.take_along_axis(logits, targets[:, None], axis=-1)[:, 0]
    ce = lse - tgt_logit
    pt = jnp.exp(-ce)
    return alpha * (1.0 - pt) ** gamma * ce


if __name__ == "__main__":
    key = jax.random.PRNGKey(0)
    k1, k2 = jax.random.split(key)

    N, C = 16, 32  # small shapes: 16 samples, 32 classes
    logits = jax.random.normal(k1, (N, C), dtype=jnp.float32)
    targets = jax.random.randint(k2, (N,), 0, C, dtype=jnp.int32)

    ref_ps = _reference_per_sample(logits, targets)

    out_mean = jax.block_until_ready(focal_loss(logits, targets, reduction="mean"))
    assert jnp.allclose(out_mean, jnp.mean(ref_ps), rtol=1e-5, atol=1e-6), (
        out_mean, jnp.mean(ref_ps))

    out_sum = jax.block_until_ready(focal_loss(logits, targets, reduction="sum"))
    assert jnp.allclose(out_sum, jnp.sum(ref_ps), rtol=1e-5, atol=1e-6), (
        out_sum, jnp.sum(ref_ps))

    out_none = jax.block_until_ready(focal_loss(logits, targets, reduction="none"))
    assert jnp.allclose(out_none, ref_ps, rtol=1e-5, atol=1e-6)

    print("KERNEL_OK")
</pallas_src>

<mosaic_0001>
module attributes {stable_mosaic.version = 11 : i64} {
  func.func @_focal_loss_kernel(%arg0: i32, %arg1: memref<16x32xf32, #tpu.memory_space<vmem>>, %arg2: memref<16x1xi32, #tpu.memory_space<vmem>>, %arg3: memref<1x128xf32, #tpu.memory_space<vmem>>) attributes {dimension_semantics = [#tpu.dimension_semantics<parallel>], iteration_bounds = array<i64: 1>, scalar_prefetch = 0 : i64, scratch_operands = 0 : i64, tpu.core_type = #tpu.core_type<tc>, window_params = [{transform_indices = @transform_0, window_bounds = array<i64: 16, 32>}, {transform_indices = @transform_1, window_bounds = array<i64: 16, 1>}, {transform_indices = @transform_2, window_bounds = array<i64: 1, 128>}]} {
    %c0 = arith.constant 0 : index
    %c0_0 = arith.constant 0 : index
    %0 = vector.load %arg1[%c0, %c0_0] : memref<16x32xf32, #tpu.memory_space<vmem>>, vector<16x32xf32>
    %c0_1 = arith.constant 0 : index
    %c0_2 = arith.constant 0 : index
    %1 = vector.load %arg2[%c0_1, %c0_2] : memref<16x1xi32, #tpu.memory_space<vmem>>, vector<16x1xi32>
    %cst = arith.constant dense<0xFF800000> : vector<16xf32>
    %2 = vector.multi_reduction <maximumf>, %0, %cst [1] : vector<16x32xf32> to vector<16xf32>
    %3 = vector.shape_cast %2 : vector<16xf32> to vector<16x1xf32>
    %4 = vector.broadcast %3 : vector<16x1xf32> to vector<16x32xf32>
    %5 = arith.subf %0, %4 : vector<16x32xf32>
    %6 = math.exp %5 : vector<16x32xf32>
    %cst_3 = arith.constant dense<0.000000e+00> : vector<16xf32>
    %7 = vector.multi_reduction <add>, %6, %cst_3 [1] : vector<16x32xf32> to vector<16xf32>
    %8 = vector.shape_cast %7 : vector<16xf32> to vector<16x1xf32>
    %9 = math.log %8 : vector<16x1xf32>
    %10 = arith.addf %9, %3 : vector<16x1xf32>
    %11 = tpu.iota {dimensions = array<i32: 1>} : vector<16x32xi32>
    %12 = vector.broadcast %1 : vector<16x1xi32> to vector<16x32xi32>
    %13 = arith.cmpi eq, %11, %12 : vector<16x32xi32>
    %c0_i32 = arith.constant 0 : i32
    %14 = arith.sitofp %c0_i32 : i32 to f32
    %15 = vector.broadcast %14 : f32 to vector<16x32xf32>
    %16 = arith.select %13, %0, %15 : vector<16x32xi1>, vector<16x32xf32>
    %cst_4 = arith.constant dense<0.000000e+00> : vector<16xf32>
    %17 = vector.multi_reduction <add>, %16, %cst_4 [1] : vector<16x32xf32> to vector<16xf32>
    %18 = vector.shape_cast %17 : vector<16xf32> to vector<16x1xf32>
    %19 = arith.subf %10, %18 : vector<16x1xf32>
    %cst_5 = arith.constant 0.000000e+00 : f32
    %20 = vector.broadcast %cst_5 : f32 to vector<16x1xf32>
    %21 = arith.subf %20, %19 : vector<16x1xf32>
    %22 = math.exp %21 : vector<16x1xf32>
    %cst_6 = arith.constant 1.000000e+00 : f32
    %23 = vector.broadcast %cst_6 : f32 to vector<16x1xf32>
    %24 = arith.subf %23, %22 : vector<16x1xf32>
    %25 = arith.mulf %24, %24 : vector<16x1xf32>
    %cst_7 = arith.constant 4.000000e-01 : f32
    %26 = vector.broadcast %cst_7 : f32 to vector<16x1xf32>
    %27 = arith.mulf %26, %25 : vector<16x1xf32>
    %28 = arith.mulf %27, %19 : vector<16x1xf32>
    %c16_i32 = arith.constant 16 : i32
    %29 = arith.muli %arg0, %c16_i32 : i32
    %30 = tpu.iota {dimensions = array<i32: 0>} : vector<16x1xi32>
    %31 = vector.broadcast %29 : i32 to vector<16x1xi32>
    %32 = arith.addi %31, %30 : vector<16x1xi32>
    %c16_i32_8 = arith.constant 16 : i32
    %33 = vector.broadcast %c16_i32_8 : i32 to vector<16x1xi32>
    %34 = arith.cmpi slt, %32, %33 : vector<16x1xi32>
    %cst_9 = arith.constant 0.000000e+00 : f32
    %35 = vector.broadcast %cst_9 : f32 to vector<16x1xf32>
    %36 = arith.select %34, %28, %35 : vector<16x1xi1>, vector<16x1xf32>
    %37 = vector.shape_cast %36 : vector<16x1xf32> to vector<1x16x1xf32>
    %cst_10 = arith.constant dense<0.000000e+00> : vector<1xf32>
    %38 = vector.multi_reduction <add>, %37, %cst_10 [1, 2] : vector<1x16x1xf32> to vector<1xf32>
    %39 = vector.shape_cast %38 : vector<1xf32> to vector<1x1x1xf32>
    %40 = vector.extract %39[0, 0, 0] : f32 from vector<1x1x1xf32>
    %41 = tpu.iota {dimensions = array<i32: 1>} : vector<1x128xi32>
    %c0_i32_11 = arith.constant 0 : i32
    %42 = vector.broadcast %c0_i32_11 : i32 to vector<1x128xi32>
    %43 = arith.cmpi eq, %41, %42 : vector<1x128xi32>
    %cst_12 = arith.constant 0.000000e+00 : f32
    %44 = vector.broadcast %40 : f32 to vector<1x128xf32>
    %45 = vector.broadcast %cst_12 : f32 to vector<1x128xf32>
    %46 = arith.select %43, %44, %45 : vector<1x128xi1>, vector<1x128xf32>
    %c0_13 = arith.constant 0 : index
    %c0_14 = arith.constant 0 : index
    %47 = vector.load %arg3[%c0_13, %c0_14] : memref<1x128xf32, #tpu.memory_space<vmem>>, vector<1x128xf32>
    tpu.vector_store %arg3[%c0_13, %c0_14], %46 {strides = array<i32>} : memref<1x128xf32, #tpu.memory_space<vmem>>, vector<1x128xf32>,
    return
  }
  func.func @transform_0(%arg0: i32) -> (i32, i32) {
    %c0_i32 = arith.constant 0 : i32
    %c0_i32_0 = arith.constant 0 : i32
    return %arg0, %c0_i32 : i32, i32
  }
  func.func @transform_1(%arg0: i32) -> (i32, i32) {
    %c0_i32 = arith.constant 0 : i32
    %c0_i32_0 = arith.constant 0 : i32
    return %arg0, %c0_i32 : i32, i32
  }
  func.func @transform_2(%arg0: i32) -> (i32, i32) {
    %c0_i32 = arith.constant 0 : i32
    %c0_i32_0 = arith.constant 0 : i32
    return %c0_i32, %arg0 : i32, i32
  }
}

</mosaic_0001>

<bundles_post_ra>
// kernel: tpu_custom_call.1
= control target key start
LH: loop header
LB: loop body
LE: loop exit
PB: predicated region body
PF: predicated region fallthrough
CT: control target
= control target key end

     0   :  { %vm16_vm0 = vcmask 261120   ;;  %v159_v4 = vmov 0   ;;  %s211_s0 = inlined_call_operand.vmem [shape: f32[16,32], index: 0, kind: input, shape index: {}]   ;;  %s212_s1 = inlined_call_operand.vmem [shape: s32[16,1], index: 1, kind: input, shape index: {}]   ;;  %s213_s2 = inlined_call_operand.hbm [shape: f32[1,128], index: 2, kind: output, shape index: {}]  }
   0x1   :  { %v12_v0 = vld [vmem:[%s211_s0] sm:$0xff]  ;;  %v13_v1 = vld [vmem:[%s211_s0 + $0x8] sm:$0xff]  ;;  %121 = vset.pattern.permute.xlu1 %v159_v4  ;;  %122 = vset.pattern.permute.xlu0 %v159_v4 }
   0x2   :  { %v14_v2 = vld [vmem:[%s212_s1] sm:$0xff]  ;;  %v17_v3 = vsel %vm16_vm0, %v12_v0, -inf }
   0x3   :  { %7 = vsyncpa [#allocation3], 0  ;;  %18 = vmax.xlane.f32.xlu0 %v17_v3  ;;  %44 = vperm.xlu1 %121, %v14_v2   ;;  %v20_v5 = vsel %vm16_vm0, %v13_v1, -inf  ;;  %v15_v6 = vld [vmem:[%s212_s1 + $0x8] sm:$0xff]  ;;  %v41_v11 = vlaneseq  ;;  %vm86_vm3 = vcmask 7168   ;;  %s160_s0 = smov [#allocation2]  }
   0x4   :  { %s109_s1 = sshll.u32 %s160_s0, 4  ;;  %s110_s1 = int_to_ptr.vmem [resolvable:$true] %s109_s1 }
   0x5   :  { %v190_v15 = vand.u32 127, %v41_v11  ;;  %s135_s18 = scalar_lea.vmem %s110_s1, 16  ;;  %s139_s19 = scalar_lea.vmem %s110_s1, 32 }
   0x6   :  { %p136_p0 = scmp.ne.s32.totalorder %s110_s1, %s135_s18  ;;  %p140_p1 = scmp.lt.s32.totalorder %s110_s1, %s110_s1 }
   0x7   :  { %21 = vmax.xlane.f32.xlu0 %v20_v5  ;;  %47 = vperm.xlu1 %121, %v15_v6   ;;  %vm99_vm4 = vcmp.eq.s32.totalorder %v190_v15, 0  ;;  %p141_p2 = scmp.lt.s32.totalorder %s139_s19, %s135_s18 }
   0x9   :  { %p142_p3 = por %p141_p2, %p140_p1 }
   0xb   :  { %p143_p4 = pnand %p142_p3, %p136_p0 }
  0x82   :  { %v45_v14 = vpop.permute.xlu1 %44 }
  0x83   :  { %vm49_vm1 = vcmp.eq.s32.totalorder %v190_v15, %v45_v14 }
  0x84   :  { %v51_v18 = vsel %vm49_vm1, %v12_v0, 0.0 }
  0x85   :  { %v53_v20 = vsel %vm16_vm0, %v51_v18, 0.0 }
  0x86   :  { %v48_v16 = vpop.permute.xlu1 %47 }
  0x87   :  { %vm50_vm2 = vcmp.eq.s32.totalorder %v190_v15, %v48_v16 }
  0x88   :  { %v52_v22 = vsel %vm50_vm2, %v13_v1, 0.0 }
  0x89   :  { %v56_v24 = vsel %vm16_vm0, %v52_v22, 0.0 }
  0x90   :  { %v19_v7 = vpop.xlane.xlu0 %18 }
  0x91   :  { %v23_v8 = vsub.f32 %v12_v0, %v19_v7 }
  0x93   :  { %v25_v9 = vmul.f32 1.442695, %v23_v8 }
  0x94   :  { %v22_v10 = vpop.xlane.xlu0 %21 }
  0x95   :  { %123 = vpow2.f32 %v25_v9  ;;  %v24_v12 = vsub.f32 %v13_v1, %v22_v10 }
  0x97   :  { %v27_v13 = vmul.f32 1.442695, %v24_v12 }
  0x99   :  { %125 = vpow2.f32 %v27_v13 }
  0x9f   :  { %v124_v17 = vpop.eup %123 }
  0xa0   :  { %v29_v19 = vsel %vm16_vm0, %v124_v17, 0.0 }
  0xa1   :  { %30 = vadd.xlane.f32.xlu0 %v29_v19 }
  0xa3   :  { %v126_v21 = vpop.eup %125 }
  0xa4   :  { %v32_v23 = vsel %vm16_vm0, %v126_v21, 0.0 }
  0xa5   :  { %33 = vadd.xlane.f32.xlu1 %v32_v23  ;;  %54 = vadd.xlane.f32.xlu0 %v53_v20 }
  0xa9   :  { %57 = vadd.xlane.f32.xlu0 %v56_v24 }
 0x12e   :  { %v31_v25 = vpop.xlane.xlu0 %30 }
 0x12f   :  { %127 = vlog2.f32 %v31_v25 }
 0x132   :  { %v34_v26 = vpop.xlane.xlu1 %33  ;;  %v55_v29 = vpop.xlane.xlu0 %54 }
 0x133   :  { %129 = vlog2.f32 %v34_v26 }
 0x136   :  { %v58_v36 = vpop.xlane.xlu0 %57 }
 0x139   :  { %v128_v27 = vpop.eup %127 }
 0x13a   :  { %v36_v28 = vmul.f32 0.6931472, %v128_v27 }
 0x13c   :  { %v39_v30 = vadd.f32 %v36_v28, %v19_v7 }
 0x13d   :  { %v130_v31 = vpop.eup %129 }
 0x13e   :  { %v38_v32 = vmul.f32 0.6931472, %v130_v31  ;;  %v59_v33 = vsub.f32 %v39_v30, %v55_v29 }
 0x140   :  { %v61_v34 = vsub.f32 0.0, %v59_v33  ;;  %v40_v35 = vadd.f32 %v38_v32, %v22_v10 }
 0x142   :  { %v63_v37 = vmul.f32 1.442695, %v61_v34  ;;  %v60_v38 = vsub.f32 %v40_v35, %v58_v36 }
 0x144   :  { %131 = vpow2.f32 %v63_v37  ;;  %v62_v39 = vsub.f32 0.0, %v60_v38 }
 0x146   :  { %v65_v40 = vmul.f32 1.442695, %v62_v39 }
 0x148   :  { %133 = vpow2.f32 %v65_v40 }
 0x14e   :  { %v132_v41 = vpop.eup %131 }
 0x14f   :  { %v67_v42 = vsub.f32 1.0, %v132_v41 }
 0x151   :  { %v69_v43 = vmul.f32 %v67_v42, %v67_v42 }
 0x152   :  { %v134_v44 = vpop.eup %133 }
 0x153   :  { %v71_v45 = vmul.f32 0.4, %v69_v43  ;;  %v68_v46 = vsub.f32 1.0, %v134_v44 }
 0x155   :  { %v70_v47 = vmul.f32 %v68_v46, %v68_v46  ;;  %v73_v48 = vmul.f32 %v71_v45, %v59_v33 }
 0x157   :  { %v72_v49 = vmul.f32 0.4, %v70_v47  ;;  %v87_v51 = vsel %vm86_vm3, %v73_v48, 0.0 }
 0x159   :  { %v74_v50 = vmul.f32 %v72_v49, %v60_v38 }
 0x15b   :  { %v88_v52 = vsel %vm86_vm3, %v74_v50, 0.0 }
 0x15c   :  { %v89_v53 = vadd.f32 %v88_v52, %v87_v51 }
 0x15e   :  { %90 = vadd.xlane.f32.xlu0 %v89_v53 }
 0x1eb   :  { %v91_v54 = vpop.xlane.xlu0 %90 }
 0x1ec   :  { %v92_v55 = vrot.slane %v91_v54, 4 }
 0x1ee   :  { %v93_v56 = vadd.f32 %v92_v55, %v91_v54 }
 0x1f0   :  { %v94_v57 = vrot.slane %v93_v56, 2 }
 0x1f2   :  { %v95_v58 = vadd.f32 %v94_v57, %v93_v56 }
 0x1f4   :  { %v96_v59 = vrot.slane %v95_v58, 1 }
 0x1f6   :  { %v97_v60 = vadd.f32 %v96_v59, %v95_v58 }
 0x1f8   :  { %117 = vpush %v97_v60 }
 0x229   :  { %s118_s17 = spop %117 }
 0x22a   :  { %v100_v61 = vstv %s118_s17 }
 0x22b   :  { %v101_v62 = vsel %vm99_vm4, %v100_v61, 0.0 }
 0x22c   :  { %102 = vst [vmem:[#allocation2] sm:$0x1] %v101_v62 }
 0x22d   :  { %146 = shalt.err (!%p143_p4)
}
 0x22e   :  { %s147_s22 = scalar_lea.hbm %s213_s2, 16 }
 0x22f   :  { %p148_p5 = scmp.ne.s32.totalorder %s213_s2, %s147_s22  ;;  %p151_p6 = scmp.lt.u32.totalorder %s147_s22, %s213_s2 }
 0x231   :  { %p153_p7 = pnand %p151_p6, %p148_p5 }
 0x233   :  { %156 = shalt.err (!%p153_p7)
}
 0x234   :  { %112 = dma.vmem_to_hbm [thread:$0]  %s110_s1, 16, %s213_s2, [#allocation3]  }
 0x235   :  { %157 = dma.done.wait [#allocation3], 16  }
 0x236   :  { %158 = vsyncadd [#allocation3], 4294967280 }
 0x237   :  { %116 = vsyncpa [#allocation3], 1 }

</bundles_post_ra>
